<compile_context>
chip_gen: v5e
topology: v5e:2x2
jax: 0.10.0
libtpu: 0.0.40
codegen_flags: <defaults>
</compile_context>

<pallas_src>
import jax
import jax.numpy as jnp
from jax.experimental import pallas as pl
from jax.experimental.pallas import tpu as pltpu


# ---------------------------------------------------------------------------
# Kernel 1: tiled linear  y = x @ W^T + b   (nn.Linear fc)
# ---------------------------------------------------------------------------

def _linear_kernel(x_ref, wt_ref, b_ref, o_ref):
    o_ref[...] = (
        jnp.dot(x_ref[...], wt_ref[...], preferred_element_type=jnp.float32)
        + b_ref[...]
    ).astype(o_ref.dtype)


def linear_pallas(x2d, w, b, *, tm=128, tn=256, compute_dtype=None):
    """x2d: (M, K), w: (N, K), b: (N,) -> (M, N) f32 (matches nn.Linear).

    Tiled over (M, N) with K kept whole per tile; both grid axes are
    'parallel' so v7x's two TensorCores can split the grid.  On v6e/v7x pass
    compute_dtype=jnp.bfloat16 for ~2x MXU throughput (accumulation stays f32
    via preferred_element_type)."""
    M, K = x2d.shape
    N = w.shape[0]
    wt = jnp.transpose(w)                               # (K, N)
    if compute_dtype is not None:
        x2d = x2d.astype(compute_dtype)
        wt = wt.astype(compute_dtype)
    tm = M if M < tm else tm
    tn = N if N < tn else tn
    grid = (pl.cdiv(M, tm), pl.cdiv(N, tn))
    return pl.pallas_call(
        _linear_kernel,
        grid=grid,
        in_specs=[
            pl.BlockSpec((tm, K), lambda i, j: (i, 0)),
            pl.BlockSpec((K, tn), lambda i, j: (0, j)),
            pl.BlockSpec((1, tn), lambda i, j: (0, j)),
        ],
        out_specs=pl.BlockSpec((tm, tn), lambda i, j: (i, j)),
        out_shape=jax.ShapeDtypeStruct((M, N), jnp.float32),
        compiler_params=pltpu.CompilerParams(
            dimension_semantics=("parallel", "parallel")),
    )(x2d, wt, b.astype(jnp.float32).reshape(1, N))


# ---------------------------------------------------------------------------
# Kernel 2: fused mean-over-tokens + linear  (torch.mean(dim=1) + mask_fc)
# ---------------------------------------------------------------------------

def _mean_linear_kernel(x_ref, wt_ref, b_ref, o_ref):
    m = jnp.mean(x_ref[...], axis=1)                    # (M, Kp) f32
    o_ref[...] = (
        jnp.dot(m, wt_ref[...], preferred_element_type=jnp.float32) + b_ref[...]
    ).astype(o_ref.dtype)


def mean_linear_pallas(x, w, b):
    """x: (M, P, K), w: (N, K), b: (N,) -> (M, N).  One call for ALL regions.
    K (255 in the module) is zero-padded to a multiple of 128 so tiles are
    lane-aligned; the zero weight columns keep the result identical."""
    M, P, K = x.shape
    N = w.shape[0]
    Kp = ((K + 127) // 128) * 128
    if Kp != K:
        x = jnp.pad(x, ((0, 0), (0, 0), (0, Kp - K)))
        w = jnp.pad(w, ((0, 0), (0, Kp - K)))
    return pl.pallas_call(
        _mean_linear_kernel,
        out_shape=jax.ShapeDtypeStruct((M, N), jnp.float32),
    )(x, jnp.transpose(w), b.reshape(1, N))


# ---------------------------------------------------------------------------
# Kernel 3: gather-based embedding lookup
#           out[b, l] = static_tbl[tok]            if tok <  V_static
#                     = dyn_tbl[b, tok - V_static] if tok >= V_static
#           (== one_hot(text) @ concat([static (shared), dyn (per batch)]))
# ---------------------------------------------------------------------------

def _embed_lookup_kernel(ids_ref, static_hbm, dyn_ref, o_ref, row_buf, sem):
    # ids_ref   : SMEM (B, L) int32        (scalar-prefetched token ids)
    # static_hbm: HBM  (V_static, D)       (shared table -- never broadcast)
    # dyn_ref   : VMEM (1, V_dyn, D)       (per-batch dynamic tail)
    # o_ref     : VMEM (1, L, D)
    # row_buf   : VMEM (2, 1, D) scratch   (double buffer for gathered rows)
    # sem       : DMA semaphores (2,)
    b = pl.program_id(0)
    V_static = static_hbm.shape[0]
    V_dyn = dyn_ref.shape[1]
    L = o_ref.shape[1]

    def static_row_copy(l, slot):
        tok = ids_ref[b, l]
        s_idx = jnp.clip(tok, 0, V_static - 1)
        return pltpu.make_async_copy(
            static_hbm.at[pl.ds(s_idx, 1), :], row_buf.at[slot], sem.at[slot])

    static_row_copy(0, 0).start()

    # L is small and static here, so the loop is unrolled (Python for).
    # TODO(synk): for long text sequences switch to pl.loop with the same body.
    for l in range(L):
        slot = l % 2
        static_row_copy(l, slot).wait()
        if l + 1 < L:
            static_row_copy(l + 1, 1 - slot).start()     # prefetch next row
        tok = ids_ref[b, l]
        d_idx = jnp.clip(tok - V_static, 0, V_dyn - 1)
        dyn_row = dyn_ref[0, pl.ds(d_idx, 1), :]          # (1, D)
        row = jnp.where(tok < V_static, row_buf[slot], dyn_row)
        # one_hot semantics: ids outside the table produce an all-zero row
        row = jnp.where(tok < V_static + V_dyn, row, jnp.zeros_like(row))
        o_ref[0, pl.ds(l, 1), :] = row.astype(o_ref.dtype)


def embed_lookup_pallas(text_ids, static_tbl, dyn_tbl):
    """text_ids: (B, L) int, static_tbl: (V_static, D), dyn_tbl: (B, V_dyn, D)
       -> (B, L, D).  Only L rows per batch are DMA'd from HBM instead of the
       whole (broadcast) table."""
    B, L = text_ids.shape
    V_static, D = static_tbl.shape
    V_dyn = dyn_tbl.shape[1]
    grid_spec = pltpu.PrefetchScalarGridSpec(
        num_scalar_prefetch=1,
        grid=(B,),
        in_specs=[
            pl.BlockSpec(memory_space=pl.ANY),                       # stays in HBM
            pl.BlockSpec((1, V_dyn, D), lambda b, ids: (b, 0, 0)),   # small tail -> VMEM
        ],
        out_specs=pl.BlockSpec((1, L, D), lambda b, ids: (b, 0, 0)),
        scratch_shapes=[
            pltpu.VMEM((2, 1, D), jnp.float32),
            pltpu.SemaphoreType.DMA((2,)),
        ],
    )
    return pl.pallas_call(
        _embed_lookup_kernel,
        grid_spec=grid_spec,
        out_shape=jax.ShapeDtypeStruct((B, L, D), jnp.float32),
        compiler_params=pltpu.CompilerParams(dimension_semantics=("arbitrary",)),
    )(text_ids.astype(jnp.int32), static_tbl, dyn_tbl)


# ---------------------------------------------------------------------------
# MyEmbedding (forward-pass equivalent)
# ---------------------------------------------------------------------------

def make_params(key, num_embeddings, embedding_dim, vis_dim, mask_dim=255):
    ks = jax.random.split(key, 7)
    return {
        "weight": jax.random.normal(ks[0], (num_embeddings, embedding_dim), jnp.float32),
        "image_token_weight": jax.random.normal(ks[1], (2, embedding_dim), jnp.float32),
        "region_token_weight": jax.random.normal(ks[2], (2, embedding_dim), jnp.float32),
        "fc_w": jax.random.normal(ks[3], (embedding_dim, vis_dim), jnp.float32) / jnp.sqrt(vis_dim),
        "fc_b": jax.random.normal(ks[4], (embedding_dim,), jnp.float32) * 0.01,
        "mask_fc_w": jax.random.normal(ks[5], (embedding_dim, mask_dim), jnp.float32) / jnp.sqrt(mask_dim),
        "mask_fc_b": jax.random.normal(ks[6], (embedding_dim,), jnp.float32) * 0.01,
    }


def my_embedding_forward(params, image_feats, region_feats, mask_feats,
                         text_ids, region2areas,
                         linear_fn, mean_linear_fn, lookup_fn):
    """image_feats : (B, T, vis_dim)      -- perceiver output for the 'image' key
       region_feats: {key: (B, n, vis_dim)}  (n == perceiver_num == 32)
       mask_feats  : {key: (B, P, 255)}      -- mask_encoder token output (pre-mean)
       text_ids    : (B, L) int32
       region2areas: list (len B) of lists of region keys (compile-time known)
    """
    B, T, K = image_feats.shape
    D = params["weight"].shape[1]
    region_keys = list(region_feats.keys())
    R = len(region_keys)
    n = region_feats[region_keys[0]].shape[1]

    # --- fc over image tokens + ALL region tokens in ONE tiled call ---------
    xs = [image_feats.reshape(B * T, K)] + [
        region_feats[k].reshape(B * n, K) for k in region_keys]
    y_all = linear_fn(jnp.concatenate(xs, axis=0), params["fc_w"], params["fc_b"])
    image_embedding = y_all[: B * T].reshape(B, T, D)
    region_fc = {}
    off = B * T
    for k in region_keys:
        region_fc[k] = y_all[off: off + B * n].reshape(B, n, D)
        off += B * n

    # --- torch.mean(dim=1) + mask_fc, fused, all regions in ONE call --------
    mask_stack = jnp.concatenate([mask_feats[k] for k in region_keys], axis=0)  # (R*B, P, 255)
    mask_emb = mean_linear_fn(mask_stack, params["mask_fc_w"], params["mask_fc_b"])
    mask_emb = mask_emb.reshape(R, B, D)

    region_embeddings = {
        k: jnp.concatenate([region_fc[k], mask_emb[j][:, None, :]], axis=1)  # (B, 33, D)
        for j, k in enumerate(region_keys)
    }

    # --- scatter glue: static concat ordered by region2areas (no .at[].set) --
    max_region = R
    rows = []
    for i in range(B):
        per_b = [region_embeddings[key][i] for key in region2areas[i]]
        while len(per_b) < max_region:
            per_b.append(jnp.zeros((n + 1, D), jnp.float32))
        rows.append(jnp.concatenate(per_b, axis=0))
    vision_region_embedding = jnp.stack(rows, axis=0)          # (B, 33*R, D)

    # --- shared static table (NOT broadcast) + per-batch dynamic tail --------
    static_table = jnp.concatenate(
        [params["weight"], params["image_token_weight"], params["region_token_weight"]],
        axis=0)                                                # (V_static, D)
    dyn_table = jnp.concatenate([image_embedding, vision_region_embedding], axis=1)

    # out = one_hot(text) @ embedding_weight  ==  row gather
    return lookup_fn(text_ids, static_table, dyn_table)


# pure-JAX reference implementations (numerical check against torch semantics)
def _linear_ref(x2d, w, b):
    return x2d @ w.T + b


def _mean_linear_ref(x, w, b):
    return jnp.mean(x, axis=1) @ w.T + b


def _lookup_ref(text_ids, static_tbl, dyn_tbl):
    B = dyn_tbl.shape[0]
    full = jnp.concatenate(
        [jnp.broadcast_to(static_tbl[None], (B,) + static_tbl.shape), dyn_tbl], axis=1)
    oh = jax.nn.one_hot(text_ids, full.shape[1], dtype=jnp.float32)
    return jnp.einsum("blv,bvd->bld", oh, full)


# ---------------------------------------------------------------------------

if __name__ == "__main__":
    # small, module-consistent shapes
    B, S = 2, 1
    perceiver_num = 32            # -> 32 region tokens + 1 mask token = 33
    vis_dim = 64                  # (768 in the module, scaled down)
    embedding_dim = 128           # (4096 in the module, scaled down)
    num_embeddings = 256          # (32000 in the module, scaled down)
    mask_dim, mask_tokens = 255, 4
    L = 8                         # text sequence length

    key = jax.random.PRNGKey(0)
    kp, k1, k2, k3, k4, k5, k6 = jax.random.split(key, 7)

    params = make_params(kp, num_embeddings, embedding_dim, vis_dim, mask_dim)

    T = S * perceiver_num
    image_feats = jax.random.normal(k1, (B, T, vis_dim), jnp.float32)
    region_feats = {
        "region_a": jax.random.normal(k2, (B, perceiver_num, vis_dim), jnp.float32),
        "region_b": jax.random.normal(k3, (B, perceiver_num, vis_dim), jnp.float32),
    }
    mask_feats = {
        "region_a": jax.random.normal(k4, (B, mask_tokens, mask_dim), jnp.float32),
        "region_b": jax.random.normal(k5, (B, mask_tokens, mask_dim), jnp.float32),
    }
    region2areas = [["region_a", "region_b"], ["region_b", "region_a"]]

    max_region = len(region_feats)
    V_total = num_embeddings + 2 + 2 + T + 33 * max_region
    text_ids = jax.random.randint(k6, (B, L), 0, V_total, dtype=jnp.int32)

    out = my_embedding_forward(
        params, image_feats, region_feats, mask_feats, text_ids, region2areas,
        linear_fn=linear_pallas,
        mean_linear_fn=mean_linear_pallas,
        lookup_fn=embed_lookup_pallas,
    )
    out = jax.block_until_ready(out)

    ref = my_embedding_forward(
        params, image_feats, region_feats, mask_feats, text_ids, region2areas,
        linear_fn=_linear_ref,
        mean_linear_fn=_mean_linear_ref,
        lookup_fn=_lookup_ref,
    )

    assert out.shape == (B, L, embedding_dim), out.shape
    assert out.dtype == jnp.float32
    assert jnp.allclose(out, ref, rtol=1e-2, atol=1e-2), float(jnp.max(jnp.abs(out - ref)))

    print("KERNEL_OK")
</pallas_src>

<mosaic_0001>
module attributes {stable_mosaic.version = 11 : i64} {
  func.func @_linear_kernel(%arg0: i32, %arg1: i32, %arg2: memref<128x64xf32, #tpu.memory_space<vmem>>, %arg3: memref<64x128xf32, #tpu.memory_space<vmem>>, %arg4: memref<1x128xf32, #tpu.memory_space<vmem>>, %arg5: memref<128x128xf32, #tpu.memory_space<vmem>>) attributes {dimension_semantics = [#tpu.dimension_semantics<parallel>, #tpu.dimension_semantics<parallel>], iteration_bounds = array<i64: 2, 1>, scalar_prefetch = 0 : i64, scratch_operands = 0 : i64, tpu.core_type = #tpu.core_type<tc>, window_params = [{transform_indices = @transform_0, window_bounds = array<i64: 128, 64>}, {transform_indices = @transform_1, window_bounds = array<i64: 64, 128>}, {transform_indices = @transform_2, window_bounds = array<i64: 1, 128>}, {transform_indices = @transform_3, window_bounds = array<i64: 128, 128>}]} {
    %c0 = arith.constant 0 : index
    %c0_0 = arith.constant 0 : index
    %0 = vector.load %arg2[%c0, %c0_0] : memref<128x64xf32, #tpu.memory_space<vmem>>, vector<128x64xf32>
    %c0_1 = arith.constant 0 : index
    %c0_2 = arith.constant 0 : index
    %1 = vector.load %arg3[%c0_1, %c0_2] : memref<64x128xf32, #tpu.memory_space<vmem>>, vector<64x128xf32>
    %cst = arith.constant dense<0.000000e+00> : vector<128x128xf32>
    %2 = tpu.matmul %0, %1, %cst {dimension_numbers = #tpu.dot_dimension_numbers<[1], [0], [0], [1], [0, 0, 1, 1], [], []>} : vector<128x64xf32>, vector<64x128xf32>, vector<128x128xf32> -> vector<128x128xf32>
    %c0_3 = arith.constant 0 : index
    %c0_4 = arith.constant 0 : index
    %3 = vector.load %arg4[%c0_3, %c0_4] : memref<1x128xf32, #tpu.memory_space<vmem>>, vector<1x128xf32>
    %4 = vector.broadcast %3 : vector<1x128xf32> to vector<128x128xf32>
    %5 = arith.addf %2, %4 : vector<128x128xf32>
    %c0_5 = arith.constant 0 : index
    %c0_6 = arith.constant 0 : index
    %6 = vector.load %arg5[%c0_5, %c0_6] : memref<128x128xf32, #tpu.memory_space<vmem>>, vector<128x128xf32>
    tpu.vector_store %arg5[%c0_5, %c0_6], %5 {strides = array<i32>} : memref<128x128xf32, #tpu.memory_space<vmem>>, vector<128x128xf32>,
    return
  }
  func.func @transform_0(%arg0: i32, %arg1: i32) -> (i32, i32) {
    %c0_i32 = arith.constant 0 : i32
    %c0_i32_0 = arith.constant 0 : i32
    return %arg0, %c0_i32 : i32, i32
  }
  func.func @transform_1(%arg0: i32, %arg1: i32) -> (i32, i32) {
    %c0_i32 = arith.constant 0 : i32
    %c0_i32_0 = arith.constant 0 : i32
    return %c0_i32, %arg1 : i32, i32
  }
  func.func @transform_2(%arg0: i32, %arg1: i32) -> (i32, i32) {
    %c0_i32 = arith.constant 0 : i32
    %c0_i32_0 = arith.constant 0 : i32
    return %c0_i32, %arg1 : i32, i32
  }
  func.func @transform_3(%arg0: i32, %arg1: i32) -> (i32, i32) {
    %c0_i32 = arith.constant 0 : i32
    return %arg0, %arg1 : i32, i32
  }
}

</mosaic_0001>

<bundles_post_ra>
// kernel: tpu_custom_call.1
= control target key start
LH: loop header
LB: loop body
LE: loop exit
PB: predicated region body
PF: predicated region fallthrough
CT: control target
= control target key end

     0   :  { %8 = vsyncpa [#allocation3], 0  ;;  %s966_s0 = inlined_call_operand.vmem [shape: f32[192,64], index: 0, kind: input, shape index: {}]   ;;  %s967_s1 = inlined_call_operand.vmem [shape: f32[64,128], index: 1, kind: input, shape index: {}]   ;;  %s968_s2 = inlined_call_operand.vmem [shape: f32[1,128], index: 2, kind: input, shape index: {}]   ;;  %s969_s3 = inlined_call_operand.hbm [shape: f32[192,128], index: 3, kind: output, shape index: {}]  }
   0x1   :  { %10 = vsyncpa [#allocation3 + $0x1], 0  ;;  %s753_s12 = smov 0   ;;  %s755_s13 = smov 0  }
   0x2   :  { %s757_s14 = smov 0   ;;  %s759_s15 = smov 0  }
   0x3   :  { %s761_s16 = smov 0   ;;  %s763_s17 = smov 0  }
   0x4 LB: > { %s522_s18 = sadd.s32 4294967295, %s728_s17   ;;  %s523_s19 = sadd.s32 4294967294, %s728_s17   ;;  %s728_s17 = sphi %s763_s17, %s16_s17   ;;  %s724_s16 = sphi %s761_s16, %s977_s16   ;;  %s720_s15 = sphi %s759_s15, %s976_s15   ;;  %s716_s14 = sphi %s757_s14, %s975_s14   ;;  %s712_s13 = sphi %s755_s13, %s974_s13   ;;  %s708_s12 = sphi %s753_s12, %s973_s12  }
   0x5   : > { %s28_s20 = sadd.s32 1, %s724_s16  ;;  %s115_s21 = sadd.s32 1, %s716_s14 }
   0x6   : > { %p30_p0 = scmp.ge.s32.totalorder %s28_s20, 2  ;;  %p125_p1 = scmp.ne.s32.totalorder %s716_s14, %s712_s13 }
   0x7   : > { %p126_p2 = scmp.eq.s32.totalorder %s522_s18, 1  ;;  %p131_p3 = scmp.ne.s32.totalorder %s712_s13, %s708_s12 }
   0x8   : > { %s979_s20 = smov (%p30_p0, %s28_s20), 0  ;;  %p132_p5 = scmp.eq.s32.totalorder %s523_s19, 1 }
   0x9   : > { %p793_p4 = por %p126_p2, %p125_p1  ;;  %s110_s23 = ssub.s32 %s724_s16, %s979_s20 }
   0xa   : > { %p528_p6 = scmp.ge.s32.totalorder %s728_s17, 1  ;;  %p113_p7 = scmp.eq.s32.totalorder %s110_s23, 0 }
   0xb   : > { %p800_p8 = por %p132_p5, %p131_p3  ;;  %p180_p9 = scmp.lt.s32.totalorder %s728_s17, 3 }
   0xc   : > { %s806_s25 = scalar_select %p113_p7, %s716_s14, %s115_s21  }
   0xd   : > { %p181_p10 = pnand %p528_p6, %p180_p9 }
   0xe   : > { %s815_s30 = sshll.u32 (!%p181_p10), %s720_s15, 4  ;;  %s212_s5 = sand.u32 (!%p181_p10), 1, %s712_s13  }
   0xf   : > { %184 = sbr.rel (%p181_p10) target bundleno = 227 (0xe3), region = 32  ;;  %p220_p11 = scmp.lt.s32.totalorder (!%p181_p10), %s815_s30, 23 }
  0x10   : > { %s900_s10 = scalar_lea.sflag (!%p181_p10), [#allocation3], %s212_s5 }
  0x14   : > { %v264_v0 = vld [vmem:[%s967_s1 + $0x38] sm:$0xff]  ;;  %v263_v1 = vld [vmem:[%s967_s1 + $0x30] sm:$0xff]  ;;  %v262_v2 = vld [vmem:[%s967_s1 + $0x28] sm:$0xff]  ;;  %s221_s6 = scalar_select %p220_p11, %s815_s30, 23  ;;  %vm269_vm0 = vcmask 523264  }
  0x15   : > { %559 = vmatpush.msra.mxu2 %v264_v0  ;;  %560 = vmatpush.msra.mxu3 %v264_v0  ;;  %v261_v3 = vld [vmem:[%s967_s1 + $0x20] sm:$0xff]  ;;  %v260_v4 = vld [vmem:[%s967_s1 + $0x18] sm:$0xff]  ;;  %v259_v5 = vld [vmem:[%s967_s1 + $0x10] sm:$0xff] }
  0x16   : > { %326 = vmatpush.msra.mxu0 %v264_v0  ;;  %558 = vmatpush.msra.mxu1 %v264_v0  ;;  %s531_s11 = sshll.u32 %s221_s6, 3  ;;  %v258_v6 = vld [vmem:[%s967_s1 + $0x8] sm:$0xff]  ;;  %v257_v7 = vld [vmem:[%s967_s1] sm:$0xff]  ;;  %s529_s6 = sshll.u32 %s212_s5, 7 }
  0x17   : > { %562 = vmatpush.msra.mxu2 %v263_v1  ;;  %563 = vmatpush.msra.mxu3 %v263_v1  ;;  %s837_s28 = scalar_lea.vmem %s966_s0, %s531_s11  ;;  %v638_v24 = vld [vmem:[%s968_s2] ss:$0 sm:$0xff]  ;;  %s880_s9 = scalar_lea.vmem [#allocation2], %s529_s6 }
  0x18   : > { %327 = vmatpush.msra.mxu0 %v263_v1  ;;  %561 = vmatpush.msra.mxu1 %v263_v1  ;;  %v249_v8 = vld [vmem:[%s837_s28 + $0x40] sm:$0xff]  ;;  %v250_v12 = vld [vmem:[%s837_s28 + $0x48] sm:$0xff]  ;;  %v251_v16 = vld [vmem:[%s837_s28 + $0x50] sm:$0xff]  ;;  %s408_s11 = ssub.s32 (%p793_p4), 24, %s815_s30 }
  0x19   : > { %565 = vmatpush.msra.mxu2 %v262_v2  ;;  %566 = vmatpush.msra.mxu3 %v262_v2  ;;  %v253_v9 = vld [vmem:[%s837_s28 + $0x60] sm:$0xff]  ;;  %v254_v13 = vld [vmem:[%s837_s28 + $0x68] sm:$0xff]  ;;  %v255_v17 = vld [vmem:[%s837_s28 + $0x70] sm:$0xff]  ;;  %p409_p12 = scmp.lt.s32.totalorder (%p793_p4), %s408_s11, 16 }
  0x1a   : > { %328 = vmatpush.msra.mxu0 %v262_v2  ;;  %564 = vmatpush.msra.mxu1 %v262_v2  ;;  %v241_v10 = vld [vmem:[%s837_s28] sm:$0xff]  ;;  %v242_v14 = vld [vmem:[%s837_s28 + $0x8] sm:$0xff]  ;;  %v243_v18 = vld [vmem:[%s837_s28 + $0x10] sm:$0xff] }
  0x1b   : > { %568 = vmatpush.msra.mxu2 %v261_v3  ;;  %569 = vmatpush.msra.mxu3 %v261_v3  ;;  %v245_v11 = vld [vmem:[%s837_s28 + $0x20] sm:$0xff]  ;;  %v246_v15 = vld [vmem:[%s837_s28 + $0x28] sm:$0xff]  ;;  %v247_v19 = vld [vmem:[%s837_s28 + $0x30] sm:$0xff] }
  0x1c   : > { %329 = vmatpush.msra.mxu0 %v261_v3  ;;  %567 = vmatpush.msra.mxu1 %v261_v3  ;;  %v252_v20 = vld [vmem:[%s837_s28 + $0x58] sm:$0xff] }
  0x1d   : > { %571 = vmatpush.msra.mxu2 %v260_v4  ;;  %572 = vmatpush.msra.mxu3 %v260_v4  ;;  %v256_v21 = vld [vmem:[%s837_s28 + $0x78] sm:$0xff] }
  0x1e   : > { %330 = vmatpush.msra.mxu0 %v260_v4  ;;  %570 = vmatpush.msra.mxu1 %v260_v4  ;;  %v244_v22 = vld [vmem:[%s837_s28 + $0x18] sm:$0xff] }
  0x1f   : > { %574 = vmatpush.msra.mxu2 %v259_v5  ;;  %575 = vmatpush.msra.mxu3 %v259_v5  ;;  %v248_v23 = vld [vmem:[%s837_s28 + $0x38] sm:$0xff] }
  0x20   : > { %331 = vmatpush.msra.mxu0 %v259_v5  ;;  %573 = vmatpush.msra.mxu1 %v259_v5 }
  0x21   : > { %577 = vmatpush.msra.mxu2 %v258_v6  ;;  %578 = vmatpush.msra.mxu3 %v258_v6 }
  0x22   : > { %332 = vmatpush.msra.mxu0 %v258_v6  ;;  %576 = vmatpush.msra.mxu1 %v258_v6 }
  0x23   : > { %580 = vmatpush.msra.mxu2 %v257_v7  ;;  %581 = vmatpush.msra.mxu3 %v257_v7 }
  0x24   : > { %540 = vmatmul.msk.f32.vlgmr.msra.gmra.mxu2 %vm269_vm0, %v249_v8  ;;  %544 = vmatmul.msk.f32.vlgmr.msra.gmra.mxu3 %vm269_vm0, %v253_v9 }
  0x25   : > { %333 = vmatpush.msra.mxu0 %v257_v7  ;;  %579 = vmatpush.msra.mxu1 %v257_v7 }
  0x26   : > { %532 = vmatmul.msk.f32.vlgmr.msra.gmra.mxu0 %vm269_vm0, %v241_v10  ;;  %536 = vmatmul.msk.f32.vlgmr.msra.gmra.mxu1 %vm269_vm0, %v245_v11 }
  0x2c   : > { %541 = vmatmul.msk.f32.gmra.mxu2 %vm269_vm0, %v250_v12  ;;  %545 = vmatmul.msk.f32.gmra.mxu3 %vm269_vm0, %v254_v13 }
  0x2e   : > { %533 = vmatmul.msk.f32.gmra.mxu0 %vm269_vm0, %v242_v14  ;;  %537 = vmatmul.msk.f32.gmra.mxu1 %vm269_vm0, %v246_v15 }
  0x34   : > { %542 = vmatmul.msk.f32.gmra.mxu2 %vm269_vm0, %v251_v16  ;;  %546 = vmatmul.msk.f32.gmra.mxu3 %vm269_vm0, %v255_v17 }
  0x36   : > { %534 = vmatmul.msk.f32.gmra.mxu0 %vm269_vm0, %v243_v18  ;;  %538 = vmatmul.msk.f32.gmra.mxu1 %vm269_vm0, %v247_v19 }
  0x3c   : > { %543 = vmatmul.msk.f32.gmra.mxu2 %vm269_vm0, %v252_v20  ;;  %547 = vmatmul.msk.f32.gmra.mxu3 %vm269_vm0, %v256_v21 }
  0x3e   : > { %535 = vmatmul.msk.f32.gmra.mxu0 %vm269_vm0, %v244_v22  ;;  %539 = vmatmul.msk.f32.gmra.mxu1 %vm269_vm0, %v248_v23 }
  0xa3   : > { %v335_v25 = vpop.f32.mrf.mxu0  ;;  %v347_v26 = vpop.f32.mrf.mxu1 }
  0xa4   : > { %v336_v27 = vadd.f32 %v638_v24, %v335_v25  ;;  %v348_v28 = vadd.f32 %v638_v24, %v347_v26 }
  0xa6   : > { %383 = vst [vmem:[%s880_s9] sm:$0xff] %v336_v27 }
  0xa7   : > { %387 = vst [vmem:[%s880_s9 + $0x20] sm:$0xff] %v348_v28  ;;  %v359_v29 = vpop.f32.mrf.mxu2  ;;  %v371_v30 = vpop.f32.mrf.mxu3 }
  0xa8   : > { %v360_v31 = vadd.f32 %v638_v24, %v359_v29  ;;  %v372_v32 = vadd.f32 %v638_v24, %v371_v30 }
  0xaa   : > { %391 = vst [vmem:[%s880_s9 + $0x40] sm:$0xff] %v360_v31 }
  0xab   : > { %395 = vst [vmem:[%s880_s9 + $0x60] sm:$0xff] %v372_v32  ;;  %v338_v33 = vpop.f32.mrf.mxu0  ;;  %v350_v34 = vpop.f32.mrf.mxu1 }
  0xac   : > { %v339_v35 = vadd.f32 %v638_v24, %v338_v33  ;;  %v351_v36 = vadd.f32 %v638_v24, %v350_v34 }
  0xae   : > { %384 = vst [vmem:[%s880_s9 + $0x8] sm:$0xff] %v339_v35 }
  0xaf   : > { %388 = vst [vmem:[%s880_s9 + $0x28] sm:$0xff] %v351_v36  ;;  %v362_v37 = vpop.f32.mrf.mxu2  ;;  %v374_v38 = vpop.f32.mrf.mxu3 }
  0xb0   : > { %v363_v39 = vadd.f32 %v638_v24, %v362_v37  ;;  %v375_v40 = vadd.f32 %v638_v24, %v374_v38 }
  0xb2   : > { %392 = vst [vmem:[%s880_s9 + $0x48] sm:$0xff] %v363_v39 }
  0xb3   : > { %396 = vst [vmem:[%s880_s9 + $0x68] sm:$0xff] %v375_v40  ;;  %v341_v41 = vpop.f32.mrf.mxu0  ;;  %v353_v42 = vpop.f32.mrf.mxu1 }
  0xb4   : > { %v342_v43 = vadd.f32 %v638_v24, %v341_v41  ;;  %v354_v44 = vadd.f32 %v638_v24, %v353_v42 }
  0xb6   : > { %385 = vst [vmem:[%s880_s9 + $0x10] sm:$0xff] %v342_v43 }
  0xb7   : > { %389 = vst [vmem:[%s880_s9 + $0x30] sm:$0xff] %v354_v44  ;;  %v365_v45 = vpop.f32.mrf.mxu2  ;;  %v377_v46 = vpop.f32.mrf.mxu3 }
  0xb8   : > { %v366_v47 = vadd.f32 %v638_v24, %v365_v45  ;;  %v378_v48 = vadd.f32 %v638_v24, %v377_v46 }
  0xba   : > { %393 = vst [vmem:[%s880_s9 + $0x50] sm:$0xff] %v366_v47 }
  0xbb   : > { %397 = vst [vmem:[%s880_s9 + $0x70] sm:$0xff] %v378_v48  ;;  %v344_v49 = vpop.f32.mrf.mxu0  ;;  %v356_v50 = vpop.f32.mrf.mxu1 }
  0xbc   : > { %v345_v51 = vadd.f32 %v638_v24, %v344_v49  ;;  %v357_v52 = vadd.f32 %v638_v24, %v356_v50 }
  0xbe   : > { %386 = vst [vmem:[%s880_s9 + $0x18] sm:$0xff] %v345_v51 }
  0xbf   : > { %390 = vst [vmem:[%s880_s9 + $0x38] sm:$0xff] %v357_v52  ;;  %v368_v53 = vpop.f32.mrf.mxu2  ;;  %v380_v54 = vpop.f32.mrf.mxu3  ;;  %406 = sbr.rel (!%p793_p4) target bundleno = 227 (0xe3), region = 36 }
  0xc0   : > { %v369_v55 = vadd.f32 %v638_v24, %v368_v53  ;;  %v381_v56 = vadd.f32 %v638_v24, %v380_v54 }
  0xc2   : > { %394 = vst [vmem:[%s880_s9 + $0x58] sm:$0xff] %v369_v55 }
  0xc3   : > { %398 = vst [vmem:[%s880_s9 + $0x78] sm:$0xff] %v381_v56 }
  0xc4   : > { %s981_s11 = smov (!%p409_p12, %s408_s11), 16 }
  0xc5   : > { %s550_s18 = sshll.u32 %s981_s11, 3 }
  0xc6   : > { %s412_s19 = ssub.s32 128, %s550_s18 }
  0xc7   : > { %s413_s21 = sshll.u32 %s412_s19, 4 }
  0xc8   : > { %414 = vsyncadd %s900_s10, %s413_s21  ;;  %p909_p13 = scmp.ne.s32.totalorder %s550_s18, 0  ;;  %s557_s22 = sshll.u32 %s720_s15, 7 }
  0xc9   : > { %s418_s27 = scalar_lea.hbm %s969_s3, %s557_s22  ;;  %s420_s28 = sshll.u32 %s880_s9, 4  ;;  %s918_s28 = int_to_ptr.vmem [resolvable:$true] %s420_s28 }
  0xca   : > { %s422_s29 = sshll.u32 %s418_s27, 4  ;;  %s554_s4 = sshll.u32 %s981_s11, 7  ;;  %s920_s29 = int_to_ptr.hbm [resolvable:$true] %s422_s29 }
  0xcb   : > { %s639_s5 = sshra.s32 %s918_s28, 4  ;;  %s641_s6 = sshrl.u32 %s554_s4, 4  ;;  %s640_s5 = int_to_ptr.vmem [resolvable:$true] %s639_s5 }
  0xcc   : > { %s646_s7 = scalar_lea.vmem %s640_s5, %s641_s6  ;;  %s730_s15 = smov [#allocation2]  }
  0xcd   : > { %p647_p0 = scmp.ne.s32.totalorder %s640_s5, %s646_s7  ;;  %s650_s8 = scalar_lea.vmem %s730_s15, 256 }
  0xce   : > { %p652_p3 = scmp.lt.s32.totalorder %s650_s8, %s646_s7 }
  0xcf   : > { %p648_p1 = pnand %p647_p0, %p909_p13 }
  0xd1   : > { %p649_p2 = pneg %p648_p1 }
  0xd3   : > { %p654_p4 = pnand %p652_p3, %p649_p2 }
  0xd5   : > { %657 = shalt.err (!%p654_p4)
}
  0xd6   : > { %s658_s9 = sshra.s32 %s920_s29, 4  ;;  %s669_s22 = scalar_lea.hbm %s969_s3, 192  ;;  %s659_s9 = int_to_ptr.hbm [resolvable:$true] %s658_s9 }
  0xd7   : > { %s665_s18 = scalar_lea.hbm %s659_s9, %s641_s6  ;;  %p670_p9 = scmp.lt.s32.totalorder %s659_s9, %s969_s3 }
  0xd8   : > { %p666_p5 = scmp.ne.s32.totalorder %s659_s9, %s665_s18  ;;  %p671_p10 = scmp.lt.s32.totalorder %s669_s22, %s665_s18 }
  0xda   : > { %p667_p6 = pnand %p666_p5, %p909_p13  ;;  %p672_p11 = por %p671_p10, %p670_p9 }
  0xdc   : > { %p668_p7 = pneg %p667_p6 }
  0xde   : > { %p673_p12 = pnand %p672_p11, %p668_p7 }
  0xe0   : > { %676 = shalt.err (!%p673_p12)
}
  0xe1   : > { %s731_s27 = smov 128   ;;  %s732_s5 = smov 8  }
  0xe2   : > { %428 = dma.vmem_to_hbm [thread:$0]  (%p909_p13), %s918_s28, %s554_s4, %s920_s29, %s900_s10, %s731_s27, %s731_s27, %s732_s5  }
  0xe3 PF: > { %p587_p0 = scmp.ge.s32.totalorder %s728_s17, 2  ;;  %s437_s6 = sand.u32 1, %s708_s12  }
  0xe4   : > { %s438_s7 = scalar_lea.sflag [#allocation3], %s437_s6 }
  0xe5   : > { %p584_p1 = pnand %p587_p0, %p800_p8 }
  0xe7   : > { %p585_p2 = pneg %p584_p1 }
  0xe9   : > { %703 = dma.done.wait (%p585_p2), %s438_s7, 2048  }
  0xea   : > { %705 = vsyncadd (%p585_p2), %s438_s7, 4294965248  ;;  %s16_s17 = sadd.s32 1, %s728_s17   ;;  %s973_s12 = smov %s712_s13 }
  0xeb   : > { %p13_p3 = scmp.ge.s32.totalorder %s16_s17, 4   ;;  %s974_s13 = smov %s716_s14 }
  0xec   : > { %s975_s14 = smov %s806_s25  ;;  %s976_s15 = smov %s724_s16 }
  0xed   : > { %s977_s16 = smov %s979_s20  ;;  %15 = sbr.rel (!%p13_p3) target bundleno = 4 (0x4), region = 73 }
  0xf2   :  { %444 = vsyncpa [#allocation3], 1 }
  0xf3   :  { %446 = vsyncpa [#allocation3 + $0x1], 1 }

</bundles_post_ra>
